<compile_context>
chip_gen: v7x
topology: tpu7x:2x2x1
jax: 0.10.0
libtpu: 0.0.40
codegen_flags: <defaults>
</compile_context>

<pallas_src>
import math
import functools

import jax
import jax.numpy as jnp
import numpy as np
from jax.experimental import pallas as pl
from jax.experimental.pallas import tpu as pltpu


_MASK_VALUE = -1e30      # large-negative instead of -inf: exp() underflows to 0, no NaNs
_MIB = 1024 * 1024


def _vmem_limit_bytes():
    """Generation-aware scoped-VMEM limit (headroom for compiler-internal scratch)."""
    cap = 128 * _MIB
    try:
        info = pltpu.get_tpu_info()
        cap = int(getattr(info, "vmem_capacity_bytes", cap))
    except Exception:
        pass
    # v7x: 64 MiB physical -> ~48 MiB usable; v5e/v6e: 128 MiB -> 112 MiB.
    return max(32 * _MIB, min(cap - 16 * _MIB, 112 * _MIB))


def _pick_block(seq, requested=None, cap=256):
    """Largest power-of-two tile <= cap dividing seq (respects the 8-sublane rule)."""
    if requested is not None:
        assert seq % requested == 0, "requested block must divide seq"
        return requested
    t = cap
    while t >= 8:
        if t <= seq and seq % t == 0:
            return t
        t //= 2
    return seq


def _pick_tile(n, cap):
    """Largest multiple-of-128 power-of-two tile <= cap dividing n, else n (tiny case)."""
    best = None
    t = 128
    while t <= min(cap, n):
        if n % t == 0:
            best = t
        t *= 2
    return best if best is not None else n


def _pick_kv_group(dim, n_kv_heads, n_rep, head_dim, dtype_bytes, vmem_limit):
    """Most kv-heads per kernel-1 step whose double-buffered weight slice fits VMEM."""
    budget = max(vmem_limit - 12 * _MIB, vmem_limit // 2)
    best = 1
    for kvg in range(1, n_kv_heads + 1):
        if n_kv_heads % kvg:
            continue
        w_bytes = dim * kvg * (n_rep + 2) * head_dim * dtype_bytes  # q + k + v slice
        if 2 * w_bytes <= budget:                                   # 2x: double buffering
            best = kvg
    return best


# ---------------------------------------------------------------------------
# Kernel 1: QKV projection + rotate-half RoPE (+ query pre-scale)
# ---------------------------------------------------------------------------
def _qkv_rope_kernel(x_ref, wq_ref, wkv_ref, cos_ref, sin_ref,
                     q_ref, k_ref, v_ref, *, n_rep, kv_heads, head_dim, scale):
    x = x_ref[...]                       # (bq, dim)
    cos = cos_ref[...]                   # (bq, hd)  = [cos | cos]
    sin = sin_ref[...]                   # (bq, hd)  = [-sin | sin]  (pre-signed)

    def rope(t):                         # rotate-half on de-interleaved columns
        return t * cos + pltpu.roll(t, shift=head_dim // 2, axis=1) * sin

    # All q heads of the group in one wide MXU dot (N = kv_heads * n_rep * hd).
    q_all = jnp.dot(x, wq_ref[...], preferred_element_type=jnp.float32)
    for h in range(kv_heads * n_rep):
        qh = q_all[:, h * head_dim:(h + 1) * head_dim]
        q_ref[h] = (rope(qh) * scale).astype(q_ref.dtype)   # fold 1/sqrt(d) into q

    # K and V fused into one dot per group (N = kv_heads * 2 * hd).
    kv_all = jnp.dot(x, wkv_ref[...], preferred_element_type=jnp.float32)
    for j in range(kv_heads):
        base = j * 2 * head_dim
        kh = kv_all[:, base:base + head_dim]
        k_ref[j] = rope(kh).astype(k_ref.dtype)
        v_ref[j] = kv_all[:, base + head_dim:base + 2 * head_dim].astype(v_ref.dtype)


# ---------------------------------------------------------------------------
# Kernel 2: flash attention (online softmax, causal tile skipping, GQA groups)
# ---------------------------------------------------------------------------
def _flash_attn_kernel(q_ref, k_ref, v_ref, o_ref, m_ref, l_ref, acc_ref,
                       *, n_rep, block_q, block_kv, head_dim, approx_recip):
    qi = pl.program_id(2)
    ki = pl.program_id(3)

    @pl.when(ki == 0)
    def _init():
        m_ref[...] = jnp.full_like(m_ref, _MASK_VALUE)
        l_ref[...] = jnp.zeros_like(l_ref)
        acc_ref[...] = jnp.zeros_like(acc_ref)

    q_first = qi * block_q
    kv_first = ki * block_kv
    q_last = q_first + (block_q - 1)
    kv_last = kv_first + (block_kv - 1)

    def _process(apply_mask):
        k = k_ref[...]                                   # (bkv, hd)
        v = v_ref[...]
        if apply_mask:                                   # built once, shared by all reps
            row = q_first + jax.lax.broadcasted_iota(jnp.int32, (block_q, block_kv), 0)
            col = kv_first + jax.lax.broadcasted_iota(jnp.int32, (block_q, block_kv), 1)
            causal = row >= col
        for r in range(n_rep):                           # all q heads of the GQA group
            s = jax.lax.dot_general(q_ref[r], k, (((1,), (1,)), ((), ())),
                                    preferred_element_type=jnp.float32)
            if apply_mask:
                s = jnp.where(causal, s, _MASK_VALUE)
            m_prev = m_ref[r]                            # (bq, hd), lane-replicated
            m_cur = jnp.max(s, axis=-1, keepdims=True)   # (bq, 1)
            m_next = jnp.maximum(m_prev, m_cur)          # (bq, hd)
            alpha = jnp.exp(m_prev - m_next)             # full-width vector ops
            p = jnp.exp(s - m_next[:, :1])
            l_ref[r] = alpha * l_ref[r] + jnp.sum(p, axis=-1, keepdims=True)
            acc_ref[r] = alpha * acc_ref[r] + jnp.dot(
                p.astype(v.dtype), v, preferred_element_type=jnp.float32)
            m_ref[r] = m_next

    needed = kv_first <= q_last           # tile has at least one unmasked entry
    crosses = kv_last > q_first           # tile crosses the causal diagonal

    @pl.when(jnp.logical_and(needed, jnp.logical_not(crosses)))
    def _full_tile():                     # entirely below the diagonal: no mask
        _process(apply_mask=False)

    @pl.when(jnp.logical_and(needed, crosses))
    def _diag_tile():
        _process(apply_mask=True)

    @pl.when(ki == pl.num_programs(3) - 1)
    def _finalize():
        for r in range(n_rep):
            inv_l = pl.reciprocal(l_ref[r], approx=approx_recip)
            o_ref[:, r * head_dim:(r + 1) * head_dim] = (
                acc_ref[r] * inv_l).astype(o_ref.dtype)


# ---------------------------------------------------------------------------
# Kernel 3: output projection (K/N-tiled GEMM, K reduction on the grid)
# ---------------------------------------------------------------------------
def _out_proj_kernel(a_ref, w_ref, o_ref, acc_ref):
    ki = pl.program_id(3)

    @pl.when(ki == 0)
    def _init():
        acc_ref[...] = jnp.zeros_like(acc_ref)

    acc_ref[...] += jnp.dot(a_ref[...], w_ref[...], preferred_element_type=jnp.float32)

    @pl.when(ki == pl.num_programs(3) - 1)
    def _fin():
        o_ref[...] = acc_ref[...].astype(o_ref.dtype)


# ---------------------------------------------------------------------------
# Wrapper
# ---------------------------------------------------------------------------
def attention_forward(x, wq, wk, wv, wo, cos, sin, *,
                      n_heads, n_kv_heads, head_dim,
                      compute_dtype=jnp.bfloat16,
                      block_q=None, block_kv=None,
                      out_block_k=None, out_block_n=None,
                      kv_heads_per_step=None):
    """x: (bs, seq, dim); weights as (in_features, out_features); cos/sin: (seq, head_dim//2)."""
    bs, seq, dim = x.shape
    assert head_dim % 2 == 0
    assert n_heads % n_kv_heads == 0
    n_rep = n_heads // n_kv_heads
    d_q = n_heads * head_dim
    scale = 1.0 / math.sqrt(head_dim)
    out_dtype = x.dtype
    vmem_limit = _vmem_limit_bytes()
    dtype_bytes = jnp.dtype(compute_dtype).itemsize

    block_q = _pick_block(seq, block_q, cap=256)
    block_kv = _pick_block(seq, block_kv, cap=512)
    n_q_blocks = seq // block_q
    n_kv_blocks = seq // block_kv

    # ---- wrapper-side layout plumbing (one-time reshape/permute/cast, no compute) ----
    xc = x.astype(compute_dtype)
    # De-interleave RoPE: within every head put the even (re) columns first, then the
    # odd (im) columns.  Q and K share the permutation, so scores/outputs are unchanged
    # and the kernel's rotary embedding is a single pltpu.roll (no iota/where/negate).
    perm = np.concatenate([np.arange(0, head_dim, 2), np.arange(1, head_dim, 2)])
    wq_p = wq.reshape(dim, n_heads, head_dim)[:, :, perm]
    wq_p = wq_p.reshape(dim, d_q).astype(compute_dtype)
    wk_p = wk.reshape(dim, n_kv_heads, head_dim)[:, :, perm]
    wv_r = wv.reshape(dim, n_kv_heads, head_dim)
    wkv_p = jnp.concatenate([wk_p, wv_r], axis=-1)               # (dim, n_kv, 2*hd)
    wkv_p = wkv_p.reshape(dim, n_kv_heads * 2 * head_dim).astype(compute_dtype)
    wo_c = wo.astype(compute_dtype)                              # (d_q, dim)
    cos_e = jnp.concatenate([cos, cos], axis=-1).astype(jnp.float32)   # (seq, hd)
    sin_e = jnp.concatenate([-sin, sin], axis=-1).astype(jnp.float32)  # pre-signed

    # ---- kernel 1: QKV + RoPE, tiled over kv-head groups so weights fit VMEM ----
    if kv_heads_per_step is None:
        kv_heads_per_step = _pick_kv_group(dim, n_kv_heads, n_rep, head_dim,
                                           dtype_bytes, vmem_limit)
    assert n_kv_heads % kv_heads_per_step == 0
    kvg = kv_heads_per_step
    qg = kvg * n_rep
    n_groups = n_kv_heads // kvg

    q_heads, k_heads, v_heads = pl.pallas_call(
        functools.partial(_qkv_rope_kernel, n_rep=n_rep, kv_heads=kvg,
                          head_dim=head_dim, scale=scale),
        grid=(bs, n_groups, n_q_blocks),
        in_specs=[
            pl.BlockSpec((None, block_q, dim), lambda b, g, i: (b, i, 0)),
            pl.BlockSpec((dim, qg * head_dim), lambda b, g, i: (0, g)),
            pl.BlockSpec((dim, kvg * 2 * head_dim), lambda b, g, i: (0, g)),
            pl.BlockSpec((block_q, head_dim), lambda b, g, i: (i, 0)),
            pl.BlockSpec((block_q, head_dim), lambda b, g, i: (i, 0)),
        ],
        out_specs=[
            pl.BlockSpec((None, qg, block_q, head_dim), lambda b, g, i: (b, g, i, 0)),
            pl.BlockSpec((None, kvg, block_q, head_dim), lambda b, g, i: (b, g, i, 0)),
            pl.BlockSpec((None, kvg, block_q, head_dim), lambda b, g, i: (b, g, i, 0)),
        ],
        out_shape=(
            jax.ShapeDtypeStruct((bs, n_heads, seq, head_dim), compute_dtype),
            jax.ShapeDtypeStruct((bs, n_kv_heads, seq, head_dim), compute_dtype),
            jax.ShapeDtypeStruct((bs, n_kv_heads, seq, head_dim), compute_dtype),
        ),
        compiler_params=pltpu.CompilerParams(
            dimension_semantics=("parallel", "parallel", "parallel"),
            vmem_limit_bytes=vmem_limit),
    )(xc, wq_p, wkv_p, cos_e, sin_e)

    # ---- kernel 2: flash attention (one K/V stream per GQA group) ----
    approx = jnp.dtype(compute_dtype) == jnp.dtype(jnp.bfloat16)
    # Clamp the kv block index so fully-masked causal tiles re-use the already
    # resident K/V block (their DMA is skipped entirely).
    last_kv = lambda qi: ((qi + 1) * block_q - 1) // block_kv
    kv_index_map = lambda b, g, qi, ki: (b, g, jnp.minimum(ki, last_kv(qi)), 0)

    attn = pl.pallas_call(
        functools.partial(_flash_attn_kernel, n_rep=n_rep, block_q=block_q,
                          block_kv=block_kv, head_dim=head_dim,
                          approx_recip=bool(approx)),
        grid=(bs, n_kv_heads, n_q_blocks, n_kv_blocks),
        in_specs=[
            pl.BlockSpec((None, n_rep, block_q, head_dim),
                         lambda b, g, qi, ki: (b, g, qi, 0)),
            pl.BlockSpec((None, None, block_kv, head_dim), kv_index_map),
            pl.BlockSpec((None, None, block_kv, head_dim), kv_index_map),
        ],
        # Lane-dense output directly in the (bs, seq, n_heads*head_dim) layout.
        out_specs=pl.BlockSpec((None, block_q, n_rep * head_dim),
                               lambda b, g, qi, ki: (b, qi, g)),
        out_shape=jax.ShapeDtypeStruct((bs, seq, d_q), compute_dtype),
        scratch_shapes=[
            pltpu.VMEM((n_rep, block_q, head_dim), jnp.float32),   # running max m
            pltpu.VMEM((n_rep, block_q, head_dim), jnp.float32),   # running denom l
            pltpu.VMEM((n_rep, block_q, head_dim), jnp.float32),   # accumulator
        ],
        compiler_params=pltpu.CompilerParams(
            dimension_semantics=("parallel", "parallel", "parallel", "arbitrary"),
            vmem_limit_bytes=vmem_limit),
    )(q_heads, k_heads, v_heads)

    # ---- kernel 3: output projection, K/N-tiled GEMM ----
    tk = _pick_tile(d_q, 1024) if out_block_k is None else out_block_k
    tn = _pick_tile(dim, 1024) if out_block_n is None else out_block_n
    assert d_q % tk == 0 and dim % tn == 0

    out = pl.pallas_call(
        _out_proj_kernel,
        grid=(bs, n_q_blocks, dim // tn, d_q // tk),
        in_specs=[
            pl.BlockSpec((None, block_q, tk), lambda b, qi, ni, ki: (b, qi, ki)),
            pl.BlockSpec((tk, tn), lambda b, qi, ni, ki: (ki, ni)),
        ],
        out_specs=pl.BlockSpec((None, block_q, tn), lambda b, qi, ni, ki: (b, qi, ni)),
        out_shape=jax.ShapeDtypeStruct((bs, seq, dim), out_dtype),
        scratch_shapes=[pltpu.VMEM((block_q, tn), jnp.float32)],
        compiler_params=pltpu.CompilerParams(
            dimension_semantics=("parallel", "parallel", "parallel", "arbitrary"),
            vmem_limit_bytes=vmem_limit),
    )(attn, wo_c)
    return out


# ---------------------------------------------------------------------------
# Pure-JAX reference (mirror of the PyTorch module) for checking
# ---------------------------------------------------------------------------
def reference_forward(x, wq, wk, wv, wo, cos, sin, *, n_heads, n_kv_heads, head_dim):
    bs, seq, dim = x.shape
    n_rep = n_heads // n_kv_heads
    xq = (x @ wq).reshape(bs, seq, n_heads, head_dim)
    xk = (x @ wk).reshape(bs, seq, n_kv_heads, head_dim)
    xv = (x @ wv).reshape(bs, seq, n_kv_heads, head_dim)

    def rope(t):
        tr = t.reshape(*t.shape[:-1], head_dim // 2, 2)
        a, b = tr[..., 0], tr[..., 1]
        c = cos[None, :, None, :]
        s = sin[None, :, None, :]
        return jnp.stack([a * c - b * s, a * s + b * c], axis=-1).reshape(t.shape)

    xq, xk = rope(xq), rope(xk)
    keys = jnp.repeat(xk, n_rep, axis=2)
    vals = jnp.repeat(xv, n_rep, axis=2)
    q = xq.transpose(0, 2, 1, 3)
    k = keys.transpose(0, 2, 1, 3)
    v = vals.transpose(0, 2, 1, 3)
    s = jnp.einsum('bhqd,bhkd->bhqk', q, k) / math.sqrt(head_dim)
    mask = jnp.tril(jnp.ones((seq, seq), bool))
    s = jnp.where(mask[None, None], s, -jnp.inf)
    p = jax.nn.softmax(s, axis=-1)
    o = jnp.einsum('bhqk,bhkd->bhqd', p, v)
    o = o.transpose(0, 2, 1, 3).reshape(bs, seq, n_heads * head_dim)
    return o @ wo


if __name__ == "__main__":
    def make_inputs(key, bs, seq, dim, n_heads, n_kv_heads):
        head_dim = dim // n_heads
        kx, kq, kk, kv, ko = jax.random.split(key, 5)
        x = jax.random.normal(kx, (bs, seq, dim), jnp.float32)
        wq = jax.random.normal(kq, (dim, n_heads * head_dim), jnp.float32) * 0.02
        wk = jax.random.normal(kk, (dim, n_kv_heads * head_dim), jnp.float32) * 0.02
        wv = jax.random.normal(kv, (dim, n_kv_heads * head_dim), jnp.float32) * 0.02
        wo = jax.random.normal(ko, (n_heads * head_dim, dim), jnp.float32) * 0.02
        theta = 10000.0
        freqs = 1.0 / (theta ** (jnp.arange(0, head_dim, 2, dtype=jnp.float32) / head_dim))
        angles = jnp.outer(jnp.arange(seq, dtype=jnp.float32), freqs)
        return x, wq, wk, wv, wo, jnp.cos(angles), jnp.sin(angles)

    key = jax.random.PRNGKey(0)
    k1, k2 = jax.random.split(key)

    # Config A: tiny shapes, f32 compute path, tight numerical check (GQA n_rep=4).
    bs, seq, dim, nh, nkv = 2, 8, 64, 4, 1
    hd = dim // nh
    x, wq, wk, wv, wo, cos, sin = make_inputs(k1, bs, seq, dim, nh, nkv)
    out = attention_forward(x, wq, wk, wv, wo, cos, sin,
                            n_heads=nh, n_kv_heads=nkv, head_dim=hd,
                            compute_dtype=jnp.float32)
    out = jax.block_until_ready(out)
    ref = reference_forward(x, wq, wk, wv, wo, cos, sin,
                            n_heads=nh, n_kv_heads=nkv, head_dim=hd)
    np.testing.assert_allclose(np.asarray(out), np.asarray(ref), rtol=2e-4, atol=1e-5)

    # Config B: bf16 fast path; multi-tile causal grid (block_q < block_kv) to
    # exercise diagonal masking / full tiles / skipped+clamped tiles, GQA groups,
    # kernel-1 head-group split, and K/N-tiled output projection.
    bs, seq, dim, nh, nkv = 2, 512, 256, 4, 2
    hd = dim // nh
    x, wq, wk, wv, wo, cos, sin = make_inputs(k2, bs, seq, dim, nh, nkv)
    out = attention_forward(x, wq, wk, wv, wo, cos, sin,
                            n_heads=nh, n_kv_heads=nkv, head_dim=hd,
                            compute_dtype=jnp.bfloat16,
                            block_q=128, block_kv=256,
                            out_block_k=128, out_block_n=128,
                            kv_heads_per_step=1)
    out = jax.block_until_ready(out)
    rq = lambda a: a.astype(jnp.bfloat16).astype(jnp.float32)  # match input quantization
    ref = reference_forward(rq(x), rq(wq), rq(wk), rq(wv), rq(wo), cos, sin,
                            n_heads=nh, n_kv_heads=nkv, head_dim=hd)
    np.testing.assert_allclose(np.asarray(out), np.asarray(ref), rtol=2.5e-2, atol=4e-3)

    print("KERNEL_OK")
</pallas_src>

<mosaic_0001>
module attributes {stable_mosaic.version = 11 : i64} {
  func.func @_qkv_rope_kernel(%arg0: i32, %arg1: i32, %arg2: i32, %arg3: memref<1x8x64xf32, #tpu.memory_space<vmem>>, %arg4: memref<64x64xf32, #tpu.memory_space<vmem>>, %arg5: memref<64x32xf32, #tpu.memory_space<vmem>>, %arg6: memref<8x16xf32, #tpu.memory_space<vmem>>, %arg7: memref<8x16xf32, #tpu.memory_space<vmem>>, %arg8: memref<1x4x8x16xf32, #tpu.memory_space<vmem>>, %arg9: memref<1x1x8x16xf32, #tpu.memory_space<vmem>>, %arg10: memref<1x1x8x16xf32, #tpu.memory_space<vmem>>) attributes {dimension_semantics = [#tpu.dimension_semantics<parallel>, #tpu.dimension_semantics<parallel>, #tpu.dimension_semantics<parallel>], iteration_bounds = array<i64: 2, 1, 1>, scalar_prefetch = 0 : i64, scratch_operands = 0 : i64, tpu.core_type = #tpu.core_type<tc>, window_params = [{transform_indices = @transform_0, window_bounds = array<i64: 1, 8, 64>}, {transform_indices = @transform_1, window_bounds = array<i64: 64, 64>}, {transform_indices = @transform_2, window_bounds = array<i64: 64, 32>}, {transform_indices = @transform_3, window_bounds = array<i64: 8, 16>}, {transform_indices = @transform_4, window_bounds = array<i64: 8, 16>}, {transform_indices = @transform_5, window_bounds = array<i64: 1, 4, 8, 16>}, {transform_indices = @transform_6, window_bounds = array<i64: 1, 1, 8, 16>}, {transform_indices = @transform_7, window_bounds = array<i64: 1, 1, 8, 16>}]} {
    %c0 = arith.constant 0 : index
    %c0_0 = arith.constant 0 : index
    %c0_1 = arith.constant 0 : index
    %0 = vector.load %arg3[%c0, %c0_0, %c0_1] : memref<1x8x64xf32, #tpu.memory_space<vmem>>, vector<1x8x64xf32>
    %1 = vector.shape_cast %0 : vector<1x8x64xf32> to vector<8x64xf32>
    %c0_2 = arith.constant 0 : index
    %c0_3 = arith.constant 0 : index
    %2 = vector.load %arg6[%c0_2, %c0_3] : memref<8x16xf32, #tpu.memory_space<vmem>>, vector<8x16xf32>
    %c0_4 = arith.constant 0 : index
    %c0_5 = arith.constant 0 : index
    %3 = vector.load %arg7[%c0_4, %c0_5] : memref<8x16xf32, #tpu.memory_space<vmem>>, vector<8x16xf32>
    %c0_6 = arith.constant 0 : index
    %c0_7 = arith.constant 0 : index
    %4 = vector.load %arg4[%c0_6, %c0_7] : memref<64x64xf32, #tpu.memory_space<vmem>>, vector<64x64xf32>
    %cst = arith.constant dense<0.000000e+00> : vector<8x64xf32>
    %5 = tpu.matmul %1, %4, %cst {dimension_numbers = #tpu.dot_dimension_numbers<[1], [0], [0], [1], [0, 0, 1, 1], [], []>} : vector<8x64xf32>, vector<64x64xf32>, vector<8x64xf32> -> vector<8x64xf32>
    %6 = vector.extract_strided_slice %5 {offsets = [0, 0], sizes = [8, 16], strides = [1, 1]} : vector<8x64xf32> to vector<8x16xf32>
    %7 = arith.mulf %6, %2 : vector<8x16xf32>
    %c8_i32 = arith.constant 8 : i32
    %8 = tpu.dynamic_rotate %6 by %c8_i32 dim 1 : vector<8x16xf32>, i32 -> vector<8x16xf32>
    %9 = arith.mulf %8, %3 : vector<8x16xf32>
    %10 = arith.addf %7, %9 : vector<8x16xf32>
    %cst_8 = arith.constant 2.500000e-01 : f32
    %11 = vector.broadcast %cst_8 : f32 to vector<8x16xf32>
    %12 = arith.mulf %10, %11 : vector<8x16xf32>
    %c0_9 = arith.constant 0 : index
    %c0_10 = arith.constant 0 : index
    %c0_11 = arith.constant 0 : index
    %c0_12 = arith.constant 0 : index
    %13 = vector.load %arg8[%c0_9, %c0_10, %c0_11, %c0_12] : memref<1x4x8x16xf32, #tpu.memory_space<vmem>>, vector<1x1x8x16xf32>
    %14 = vector.shape_cast %13 : vector<1x1x8x16xf32> to vector<8x16xf32>
    %15 = vector.shape_cast %12 : vector<8x16xf32> to vector<1x1x8x16xf32>
    tpu.vector_store %arg8[%c0_9, %c0_10, %c0_11, %c0_12], %15 {strides = array<i32>} : memref<1x4x8x16xf32, #tpu.memory_space<vmem>>, vector<1x1x8x16xf32>,
    %16 = vector.extract_strided_slice %5 {offsets = [0, 16], sizes = [8, 16], strides = [1, 1]} : vector<8x64xf32> to vector<8x16xf32>
    %17 = arith.mulf %16, %2 : vector<8x16xf32>
    %c8_i32_13 = arith.constant 8 : i32
    %18 = tpu.dynamic_rotate %16 by %c8_i32_13 dim 1 : vector<8x16xf32>, i32 -> vector<8x16xf32>
    %19 = arith.mulf %18, %3 : vector<8x16xf32>
    %20 = arith.addf %17, %19 : vector<8x16xf32>
    %cst_14 = arith.constant 2.500000e-01 : f32
    %21 = vector.broadcast %cst_14 : f32 to vector<8x16xf32>
    %22 = arith.mulf %20, %21 : vector<8x16xf32>
    %c0_15 = arith.constant 0 : index
    %c1 = arith.constant 1 : index
    %c0_16 = arith.constant 0 : index
    %c0_17 = arith.constant 0 : index
    %23 = vector.load %arg8[%c0_15, %c1, %c0_16, %c0_17] : memref<1x4x8x16xf32, #tpu.memory_space<vmem>>, vector<1x1x8x16xf32>
    %24 = vector.shape_cast %23 : vector<1x1x8x16xf32> to vector<8x16xf32>
    %25 = vector.shape_cast %22 : vector<8x16xf32> to vector<1x1x8x16xf32>
    tpu.vector_store %arg8[%c0_15, %c1, %c0_16, %c0_17], %25 {strides = array<i32>} : memref<1x4x8x16xf32, #tpu.memory_space<vmem>>, vector<1x1x8x16xf32>,
    %26 = vector.extract_strided_slice %5 {offsets = [0, 32], sizes = [8, 16], strides = [1, 1]} : vector<8x64xf32> to vector<8x16xf32>
    %27 = arith.mulf %26, %2 : vector<8x16xf32>
    %c8_i32_18 = arith.constant 8 : i32
    %28 = tpu.dynamic_rotate %26 by %c8_i32_18 dim 1 : vector<8x16xf32>, i32 -> vector<8x16xf32>
    %29 = arith.mulf %28, %3 : vector<8x16xf32>
    %30 = arith.addf %27, %29 : vector<8x16xf32>
    %cst_19 = arith.constant 2.500000e-01 : f32
    %31 = vector.broadcast %cst_19 : f32 to vector<8x16xf32>
    %32 = arith.mulf %30, %31 : vector<8x16xf32>
    %c0_20 = arith.constant 0 : index
    %c2 = arith.constant 2 : index
    %c0_21 = arith.constant 0 : index
    %c0_22 = arith.constant 0 : index
    %33 = vector.load %arg8[%c0_20, %c2, %c0_21, %c0_22] : memref<1x4x8x16xf32, #tpu.memory_space<vmem>>, vector<1x1x8x16xf32>
    %34 = vector.shape_cast %33 : vector<1x1x8x16xf32> to vector<8x16xf32>
    %35 = vector.shape_cast %32 : vector<8x16xf32> to vector<1x1x8x16xf32>
    tpu.vector_store %arg8[%c0_20, %c2, %c0_21, %c0_22], %35 {strides = array<i32>} : memref<1x4x8x16xf32, #tpu.memory_space<vmem>>, vector<1x1x8x16xf32>,
    %36 = vector.extract_strided_slice %5 {offsets = [0, 48], sizes = [8, 16], strides = [1, 1]} : vector<8x64xf32> to vector<8x16xf32>
    %37 = arith.mulf %36, %2 : vector<8x16xf32>
    %c8_i32_23 = arith.constant 8 : i32
    %38 = tpu.dynamic_rotate %36 by %c8_i32_23 dim 1 : vector<8x16xf32>, i32 -> vector<8x16xf32>
    %39 = arith.mulf %38, %3 : vector<8x16xf32>
    %40 = arith.addf %37, %39 : vector<8x16xf32>
    %cst_24 = arith.constant 2.500000e-01 : f32
    %41 = vector.broadcast %cst_24 : f32 to vector<8x16xf32>
    %42 = arith.mulf %40, %41 : vector<8x16xf32>
    %c0_25 = arith.constant 0 : index
    %c3 = arith.constant 3 : index
    %c0_26 = arith.constant 0 : index
    %c0_27 = arith.constant 0 : index
    %43 = vector.load %arg8[%c0_25, %c3, %c0_26, %c0_27] : memref<1x4x8x16xf32, #tpu.memory_space<vmem>>, vector<1x1x8x16xf32>
    %44 = vector.shape_cast %43 : vector<1x1x8x16xf32> to vector<8x16xf32>
    %45 = vector.shape_cast %42 : vector<8x16xf32> to vector<1x1x8x16xf32>
    tpu.vector_store %arg8[%c0_25, %c3, %c0_26, %c0_27], %45 {strides = array<i32>} : memref<1x4x8x16xf32, #tpu.memory_space<vmem>>, vector<1x1x8x16xf32>,
    %c0_28 = arith.constant 0 : index
    %c0_29 = arith.constant 0 : index
    %46 = vector.load %arg5[%c0_28, %c0_29] : memref<64x32xf32, #tpu.memory_space<vmem>>, vector<64x32xf32>
    %cst_30 = arith.constant dense<0.000000e+00> : vector<8x32xf32>
    %47 = tpu.matmul %1, %46, %cst_30 {dimension_numbers = #tpu.dot_dimension_numbers<[1], [0], [0], [1], [0, 0, 1, 1], [], []>} : vector<8x64xf32>, vector<64x32xf32>, vector<8x32xf32> -> vector<8x32xf32>
    %48 = vector.extract_strided_slice %47 {offsets = [0, 0], sizes = [8, 16], strides = [1, 1]} : vector<8x32xf32> to vector<8x16xf32>
    %49 = arith.mulf %48, %2 : vector<8x16xf32>
    %c8_i32_31 = arith.constant 8 : i32
    %50 = tpu.dynamic_rotate %48 by %c8_i32_31 dim 1 : vector<8x16xf32>, i32 -> vector<8x16xf32>
    %51 = arith.mulf %50, %3 : vector<8x16xf32>
    %52 = arith.addf %49, %51 : vector<8x16xf32>
    %c0_32 = arith.constant 0 : index
    %c0_33 = arith.constant 0 : index
    %c0_34 = arith.constant 0 : index
    %c0_35 = arith.constant 0 : index
    %53 = vector.load %arg9[%c0_32, %c0_33, %c0_34, %c0_35] : memref<1x1x8x16xf32, #tpu.memory_space<vmem>>, vector<1x1x8x16xf32>
    %54 = vector.shape_cast %53 : vector<1x1x8x16xf32> to vector<8x16xf32>
    %55 = vector.shape_cast %52 : vector<8x16xf32> to vector<1x1x8x16xf32>
    tpu.vector_store %arg9[%c0_32, %c0_33, %c0_34, %c0_35], %55 {strides = array<i32>} : memref<1x1x8x16xf32, #tpu.memory_space<vmem>>, vector<1x1x8x16xf32>,
    %56 = vector.extract_strided_slice %47 {offsets = [0, 16], sizes = [8, 16], strides = [1, 1]} : vector<8x32xf32> to vector<8x16xf32>
    %c0_36 = arith.constant 0 : index
    %c0_37 = arith.constant 0 : index
    %c0_38 = arith.constant 0 : index
    %c0_39 = arith.constant 0 : index
    %57 = vector.load %arg10[%c0_36, %c0_37, %c0_38, %c0_39] : memref<1x1x8x16xf32, #tpu.memory_space<vmem>>, vector<1x1x8x16xf32>
    %58 = vector.shape_cast %57 : vector<1x1x8x16xf32> to vector<8x16xf32>
    %59 = vector.shape_cast %56 : vector<8x16xf32> to vector<1x1x8x16xf32>
    tpu.vector_store %arg10[%c0_36, %c0_37, %c0_38, %c0_39], %59 {strides = array<i32>} : memref<1x1x8x16xf32, #tpu.memory_space<vmem>>, vector<1x1x8x16xf32>,
    return
  }
  func.func @transform_0(%arg0: i32, %arg1: i32, %arg2: i32) -> (i32, i32, i32) {
    %c0_i32 = arith.constant 0 : i32
    %c0_i32_0 = arith.constant 0 : i32
    return %arg0, %arg2, %c0_i32 : i32, i32, i32
  }
  func.func @transform_1(%arg0: i32, %arg1: i32, %arg2: i32) -> (i32, i32) {
    %c0_i32 = arith.constant 0 : i32
    %c0_i32_0 = arith.constant 0 : i32
    return %c0_i32, %arg1 : i32, i32
  }
  func.func @transform_2(%arg0: i32, %arg1: i32, %arg2: i32) -> (i32, i32) {
    %c0_i32 = arith.constant 0 : i32
    %c0_i32_0 = arith.constant 0 : i32
    return %c0_i32, %arg1 : i32, i32
  }
  func.func @transform_3(%arg0: i32, %arg1: i32, %arg2: i32) -> (i32, i32) {
    %c0_i32 = arith.constant 0 : i32
    %c0_i32_0 = arith.constant 0 : i32
    return %arg2, %c0_i32 : i32, i32
  }
  func.func @transform_4(%arg0: i32, %arg1: i32, %arg2: i32) -> (i32, i32) {
    %c0_i32 = arith.constant 0 : i32
    %c0_i32_0 = arith.constant 0 : i32
    return %arg2, %c0_i32 : i32, i32
  }
  func.func @transform_5(%arg0: i32, %arg1: i32, %arg2: i32) -> (i32, i32, i32, i32) {
    %c0_i32 = arith.constant 0 : i32
    %c0_i32_0 = arith.constant 0 : i32
    return %arg0, %arg1, %arg2, %c0_i32 : i32, i32, i32, i32
  }
  func.func @transform_6(%arg0: i32, %arg1: i32, %arg2: i32) -> (i32, i32, i32, i32) {
    %c0_i32 = arith.constant 0 : i32
    %c0_i32_0 = arith.constant 0 : i32
    return %arg0, %arg1, %arg2, %c0_i32 : i32, i32, i32, i32
  }
  func.func @transform_7(%arg0: i32, %arg1: i32, %arg2: i32) -> (i32, i32, i32, i32) {
    %c0_i32 = arith.constant 0 : i32
    %c0_i32_0 = arith.constant 0 : i32
    return %arg0, %arg1, %arg2, %c0_i32 : i32, i32, i32, i32
  }
}

</mosaic_0001>

<bundles_post_ra>
// kernel: tpu_custom_call.1
= control target key start
LH: loop header
LB: loop body
LE: loop exit
PB: predicated region body
PF: predicated region fallthrough
CT: control target
= control target key end

     0   :  { %s2028_s0 = inlined_call_operand.hbm [shape: f32[2,8,64], index: 0, kind: input, shape index: {}]   ;;  %s2029_s1 = inlined_call_operand.hbm [shape: f32[64,64], index: 1, kind: input, shape index: {}]   ;;  %s2030_s2 = inlined_call_operand.hbm [shape: f32[64,32], index: 2, kind: input, shape index: {}]   ;;  %s2031_s3 = inlined_call_operand.hbm [shape: f32[8,16], index: 3, kind: input, shape index: {}]   ;;  %s2032_s4 = inlined_call_operand.hbm [shape: f32[8,16], index: 4, kind: input, shape index: {}]   ;;  %s2033_s5 = inlined_call_operand.hbm [shape: f32[2,4,8,16], index: 5, kind: output, shape index: {0}]   ;;  %s2034_s6 = inlined_call_operand.hbm [shape: f32[2,1,8,16], index: 6, kind: output, shape index: {1}]   ;;  %s2035_s7 = inlined_call_operand.hbm [shape: f32[2,1,8,16], index: 7, kind: output, shape index: {2}]  }
   0x1   :  { %2044 = sst [smem:[#allocation20_spill]] %s2028_s0 }
   0x2   :  { %2045 = sst [smem:[#allocation21_spill]] %s2029_s1 }
   0x3   :  { %2046 = sst [smem:[#allocation22_spill]] %s2030_s2 }
   0x4   :  { %2047 = sst [smem:[#allocation23_spill]] %s2035_s7 }
   0x5   :  { %13 = vsyncpa [#allocation3], 0 }
   0x6   :  { %15 = vsyncpa [#allocation3 + $0x1], 0 }
   0x7   :  { %16 = vsyncpa [#allocation6], 0 }
   0x8   :  { %17 = vsyncpa [#allocation9], 0 }
   0x9   :  { %18 = vsyncpa [#allocation4], 0 }
   0xa   :  { %20 = vsyncpa [#allocation4 + $0x1], 0 }
   0xb   :  { %21 = vsyncpa [#allocation13], 0 }
   0xc   :  { %23 = vsyncpa [#allocation13 + $0x1], 0  ;;  %s1570_s24 = smov 0   ;;  %s1572_s25 = smov 0  }
   0xd   :  { %s1574_s26 = smov 0   ;;  %s1576_s27 = smov 0  }
   0xe   :  { %s1578_s28 = smov 0   ;;  %s1580_s29 = smov 0  }
   0xf LB: > { %s1601_s30 = sadd.s32 4294967295, %s1504_s29   ;;  %p971_p0 = scmp.ge.s32.totalorder %s1504_s29, 1  ;;  %s1504_s29 = sphi %s1580_s29, %s29_s29   ;;  %s1500_s28 = sphi %s1578_s28, %s2078_s28   ;;  %s1496_s27 = sphi %s1576_s27, %s2077_s27   ;;  %s1492_s26 = sphi %s1574_s26, %s2076_s26   ;;  %s1488_s25 = sphi %s1572_s25, %s2075_s25   ;;  %s1484_s24 = sphi %s1570_s24, %s2074_s24  }
  0x10   : > { %p2037_p1 = scmp.eq.s32.totalorder %s1601_s30, 0  ;;  %p275_p2 = scmp.lt.s32.totalorder %s1504_s29, 3 }
  0x11   : > { %s1506_s9 = smov [#allocation5]   ;;  %s1507_s12 = smov [#allocation8]  }
  0x12   : > { %p1606_p3 = pnand %p971_p0, %p275_p2  ;;  %s289_s10 = sshll.u32 %s1506_s9, 4  ;;  %s1610_s10 = int_to_ptr.vmem [resolvable:$true] %s289_s10 }
  0x13   : > { %s320_s13 = sshll.u32 %s1507_s12, 4  ;;  %s1508_s14 = smov [#allocation7]   ;;  %s1621_s13 = int_to_ptr.vmem [resolvable:$true] %s320_s13 }
  0x14   : > { %s2048_s8 = scalar_select %p1606_p3, 1, 0 }
  0x15   : > { %p1107_p4 = pneg %p1606_p3  ;;  %s1623_s15 = sshll.u32 %s1508_s14, 4  ;;  %s305_s15 = int_to_ptr.vmem [resolvable:$true] %s1623_s15 }
  0x16   : > { %s2050_s1 = sld [smem:[#allocation21_spill]] }
  0x17   : > { %p1617_p6 = pnand %p1107_p4, %p2037_p1 }
  0x19   : > { %p1633_p8 = pneg %p1617_p6 }
  0x1c   : > { %s1212_s18 = scalar_lea.hbm %s2050_s1, 1024 }
  0x1d   : > { %p1213_p7 = scmp.ne.s32.totalorder %s2050_s1, %s1212_s18  ;;  %p1219_p11 = scmp.lt.u32.totalorder %s1212_s18, %s2050_s1 }
  0x1f   : > { %p1215_p9 = pnand %p1633_p8, %p1213_p7 }
  0x21   : > { %p1216_p10 = pneg %p1215_p9 }
  0x23   : > { %p1221_p12 = pnand %p1219_p11, %p1216_p10 }
  0x25   : > { %1224 = shalt.err (!%p1221_p12)
}
  0x26   : > { %s1225_s9 = scalar_lea.vmem %s1610_s10, 1024  ;;  %p1233_p4 = scmp.lt.s32.totalorder %s1610_s10, %s1610_s10 }
  0x27   : > { %p1226_p13 = scmp.ne.s32.totalorder %s1610_s10, %s1225_s9  ;;  %p1234_p5 = scmp.lt.s32.totalorder %s1225_s9, %s1225_s9 }
  0x29   : > { %p1228_p0 = pnand %p1226_p13, %p1633_p8  ;;  %p1235_p7 = por %p1234_p5, %p1233_p4 }
  0x2b   : > { %p1229_p2 = pneg %p1228_p0 }
  0x2d   : > { %p1236_p9 = pnand %p1235_p7, %p1229_p2 }
  0x2f   : > { %1239 = shalt.err (!%p1236_p9)
}
  0x30   : > { %s1509_s12 = smov 128   ;;  %s1510_s14 = smov 8  }
  0x31   : > { %1110 = dma.hbm_to_vmem [thread:$0]  (!%p1617_p6), %s2050_s1, 1024, %s1610_s10, [#allocation6], %s1509_s12, %s1509_s12, %s1510_s14  }
  0x32   : > { %s1240_s20 = scalar_lea.hbm %s2031_s3, 128 }
  0x33   : > { %p1241_p5 = scmp.ne.s32.totalorder %s2031_s3, %s1240_s20  ;;  %p1247_p12 = scmp.lt.u32.totalorder %s1240_s20, %s2031_s3 }
  0x35   : > { %p1243_p10 = pnand %p1241_p5, %p1633_p8 }
  0x37   : > { %p1244_p11 = pneg %p1243_p10 }
  0x39   : > { %p1249_p13 = pnand %p1247_p12, %p1244_p11 }
  0x3b   : > { %1252 = shalt.err (!%p1249_p13)
}
  0x3c   : > { %s1253_s10 = scalar_lea.vmem %s1621_s13, 128  ;;  %p1261_p7 = scmp.lt.s32.totalorder %s1621_s13, %s1621_s13 }
  0x3d   : > { %p1254_p0 = scmp.ne.s32.totalorder %s1621_s13, %s1253_s10  ;;  %p1262_p9 = scmp.lt.s32.totalorder %s1253_s10, %s1253_s10 }
  0x3f   : > { %p1256_p2 = pnand %p1254_p0, %p1633_p8  ;;  %p1263_p5 = por %p1262_p9, %p1261_p7 }
  0x41   : > { %p1257_p4 = pneg %p1256_p2 }
  0x43   : > { %p1264_p10 = pnand %p1263_p5, %p1257_p4 }
  0x45   : > { %1267 = shalt.err (!%p1264_p10)
}
  0x46   : > { %1116 = dma.hbm_to_vmem [thread:$0]  (!%p1617_p6), %s2031_s3, 128, %s1621_s13, [#allocation9]  }
  0x47   : > { %s2052_s2 = sld [smem:[#allocation22_spill]] }
  0x4d   : > { %s1268_s19 = scalar_lea.hbm %s2052_s2, 1024 }
  0x4e   : > { %p1269_p11 = scmp.ne.s32.totalorder %s2052_s2, %s1268_s19  ;;  %p1275_p0 = scmp.lt.u32.totalorder %s1268_s19, %s2052_s2 }
  0x50   : > { %p1271_p12 = pnand %p1269_p11, %p1633_p8 }
  0x52   : > { %p1272_p13 = pneg %p1271_p12 }
  0x54   : > { %p1277_p2 = pnand %p1275_p0, %p1272_p13 }
  0x56   : > { %1280 = shalt.err (!%p1277_p2)
}
  0x57   : > { %s1281_s10 = scalar_lea.vmem %s305_s15, 1024  ;;  %p1289_p5 = scmp.lt.s32.totalorder %s305_s15, %s305_s15 }
  0x58   : > { %p1282_p4 = scmp.ne.s32.totalorder %s305_s15, %s1281_s10  ;;  %p1290_p10 = scmp.lt.s32.totalorder %s1281_s10, %s1281_s10 }
  0x5a   : > { %p1284_p7 = pnand %p1282_p4, %p1633_p8  ;;  %p1291_p1 = por %p1290_p10, %p1289_p5 }
  0x5c   : > { %p1285_p9 = pneg %p1284_p7 }
  0x5e   : > { %p1292_p3 = pnand %p1291_p1, %p1285_p9 }
  0x60   : > { %1295 = shalt.err (!%p1292_p3)
}
  0x61   : > { %1113 = dma.hbm_to_vmem [thread:$0]  (!%p1617_p6), %s2052_s2, 1024, %s305_s15, [#allocation6], %s1509_s12, %s1509_s12, %s1510_s14  }
  0x62   : > { %s1511_s16 = smov [#allocation10]   ;;  %s1296_s20 = scalar_lea.hbm %s2032_s4, 128 }
  0x63   : > { %s333_s17 = sshll.u32 %s1511_s16, 4  ;;  %p1297_p1 = scmp.ne.s32.totalorder %s2032_s4, %s1296_s20  ;;  %s334_s17 = int_to_ptr.vmem [resolvable:$true] %s333_s17 }
  0x64   : > { %p1303_p12 = scmp.lt.u32.totalorder %s1296_s20, %s2032_s4 }
  0x65   : > { %p1299_p3 = pnand %p1297_p1, %p1633_p8 }
  0x67   : > { %p1300_p11 = pneg %p1299_p3 }
  0x69   : > { %p1305_p13 = pnand %p1303_p12, %p1300_p11 }
  0x6b   : > { %1308 = shalt.err (!%p1305_p13)
}
  0x6c   : > { %s1309_s15 = scalar_lea.vmem %s334_s17, 128  ;;  %p1317_p7 = scmp.lt.s32.totalorder %s334_s17, %s334_s17 }
  0x6d   : > { %p1310_p0 = scmp.ne.s32.totalorder %s334_s17, %s1309_s15  ;;  %p1318_p9 = scmp.lt.s32.totalorder %s1309_s15, %s1309_s15 }
  0x6f   : > { %p1312_p2 = pnand %p1310_p0, %p1633_p8  ;;  %p1319_p5 = por %p1318_p9, %p1317_p7 }
  0x71   : > { %p1313_p4 = pneg %p1312_p2 }
  0x73   : > { %p1320_p10 = pnand %p1319_p5, %p1313_p4 }
  0x75   : > { %1323 = shalt.err (!%p1320_p10)
}
  0x76   : > { %1119 = dma.hbm_to_vmem [thread:$0]  (!%p1617_p6), %s2032_s4, 128, %s334_s17, [#allocation9]  }
  0x77   : > { %s2039_s21 = sadd.s32 4294967294, %s1504_s29   ;;  %s48_s13 = sadd.s32 1, %s1500_s28 }
  0x78   : > { %p50_p8 = scmp.ge.s32.totalorder %s48_s13, 2  ;;  %s57_s11 = sadd.s32 1, %s1492_s26 }
  0x79   : > { %p64_p1 = scmp.ne.s32.totalorder %s1492_s26, %s1488_s25  ;;  %p65_p3 = scmp.eq.s32.totalorder %s1504_s29, 0 }
  0x7a   : > { %s2080_s13 = smov (%p50_p8, %s48_s13), 0  ;;  %p70_p12 = scmp.ne.s32.totalorder %s1488_s25, %s1484_s24 }
  0x7b   : > { %p1728_p11 = por %p65_p3, %p64_p1  ;;  %s52_s16 = ssub.s32 %s1500_s28, %s2080_s13 }
  0x7c   : > { %p202_p6 = scmp.eq.s32.totalorder %s1601_s30, 1  ;;  %p55_p13 = scmp.eq.s32.totalorder %s52_s16, 0 }
  0x7d   : > { %p2054_p0 = scmp.eq.s32.totalorder %s1601_s30, 0  ;;  %p208_p7 = scmp.eq.s32.totalorder %s2039_s21, 1 }
  0x7e   : > { %p1743_p4 = por %p202_p6, %p64_p1  ;;  %p1138_p5 = scmp.lt.s32.totalorder %s1504_s29, 2 }
  0x7f   : > { %p1739_p2 = por %p2054_p0, %p70_p12  ;;  %p1752_p9 = por %p208_p7, %p70_p12 }
  0x80   : > { %s2056_s18 = scalar_select %p1743_p4, 1, 0 }
  0x81   : > { %s1750_s19 = scalar_select %p55_p13, %s1492_s26, %s57_s11  }
  0x82   : > { %s2057_s20 = scalar_select %p1752_p9, 1, 0 }
  0x83   : > { %s344_s22 = sand.u32 1, %s1492_s26   ;;  %s978_s23 = sshll.u32 %s1500_s28, 7 }
  0x84   : > { %s977_s9 = sshll.u32 %s344_s22, 3  ;;  %s2058_s0 = sld [smem:[#allocation20_spill]] }
  0x85   : > { %s348_s14 = scalar_lea.vmem [#allocation2], %s977_s9  ;;  %p1766_p10 = pnand %p1138_p5, %p1728_p11 }
  0x86   : > { %s356_s11 = sshll.u32 %s348_s14, 4  ;;  %s345_s21 = scalar_lea.sflag [#allocation3], %s344_s22  ;;  %s1770_s11 = int_to_ptr.vmem [resolvable:$true] %s356_s11 }
  0x87   : > { %p1326_p1 = pneg %p1766_p10 }
  0x8a   : > { %s1762_s12 = scalar_lea.hbm %s2058_s0, %s978_s23  ;;  %s1329_s7 = scalar_lea.hbm %s2058_s0, 256 }
  0x8b   : > { %s1324_s1 = scalar_lea.hbm %s1762_s12, 128  ;;  %p1330_p11 = scmp.lt.u32.totalorder %s1762_s12, %s2058_s0 }
  0x8c   : > { %p1325_p8 = scmp.ne.s32.totalorder %s1762_s12, %s1324_s1  ;;  %p1331_p6 = scmp.lt.u32.totalorder %s1329_s7, %s1324_s1 }
  0x8d   : > { %p1333_p0 = scmp.lt.u32.totalorder %s1324_s1, %s1762_s12 }
  0x8e   : > { %p1327_p3 = pnand %p1326_p1, %p1325_p8  ;;  %p1332_p13 = por %p1331_p6, %p1330_p11 }
  0x90   : > { %p1328_p12 = pneg %p1327_p3  ;;  %p1334_p7 = por %p1333_p0, %p1332_p13 }
  0x92   : > { %p1335_p5 = pnand %p1334_p7, %p1328_p12 }
  0x94   : > { %1338 = shalt.err (!%p1335_p5)
}
  0x95   : > { %s1339_s22 = scalar_lea.vmem %s1770_s11, 128  ;;  %s1512_s14 = smov [#allocation2]  }
  0x96   : > { %p1340_p8 = scmp.ne.s32.totalorder %s1770_s11, %s1339_s22  ;;  %s1344_s23 = sshll.u32 %s1512_s14, 4  ;;  %s1345_s23 = int_to_ptr.vmem [resolvable:$false] %s1344_s23 }
  0x97   : > { %s1346_s9 = scalar_lea.vmem %s1345_s23, 256  ;;  %p1347_p4 = scmp.lt.s32.totalorder %s1770_s11, %s1345_s23 }
  0x98   : > { %p1342_p3 = pnand %p1340_p8, %p1326_p1  ;;  %p1348_p11 = scmp.lt.s32.totalorder %s1346_s9, %s1339_s22 }
  0x9a   : > { %p1343_p9 = pneg %p1342_p3  ;;  %p1349_p6 = por %p1348_p11, %p1347_p4 }
  0x9c   : > { %p1350_p13 = pnand %p1349_p6, %p1343_p9 }
  0x9e   : > { %1353 = shalt.err (!%p1350_p13)
}
  0x9f   : > { %1123 = dma.hbm_to_vmem [thread:$0]  (!%p1766_p10), %s1762_s12, 128, %s1770_s11, %s345_s21  }
  0xa0   : > { %p2060_p12 = scmp.ne.s32.totalorder %s2048_s8, 0 }
  0xa1   : > { %s1800_s1 = sand.u32 (!%p2060_p12), 1, %s1488_s25  }
  0xa2   : > { %365 = sbr.rel (%p2060_p12) target bundleno = 1059 (0x423), region = 40  ;;  %s1803_s7 = sshll.u32 (!%p2060_p12), %s1800_s1, 3 }
  0xa3   : > { %s368_s10 = scalar_lea.sflag (!%p2060_p12), [#allocation3], %s1800_s1  ;;  %s371_s15 = scalar_lea.vmem (!%p2060_p12), [#allocation2], %s1803_s7 }
  0xa9   : > { %1463 = dma.done.wait (%p1739_p2), %s368_s10, 128  }
  0xaa   : > { %1465 = vsyncadd (%p1739_p2), %s368_s10, 4294967168  ;;  %p2061_p4 = scmp.eq.s32.totalorder %s1601_s30, 0 }
  0xac   : > { %1467 = dma.done.wait (%p2061_p4), [#allocation6], 2048   ;;  %p2062_p9 = pmov %p2061_p4 }
  0xad   : > { %p2063_p10 = pmov %p2061_p4 }
  0xae   : > { %1469 = vsyncadd (%p2062_p9), [#allocation6], 4294965248 }
  0xaf   : > { %1471 = dma.done.wait (%p2063_p10), [#allocation9], 256   ;;  %p2064_p1 = pmov %p2061_p4 }
  0xb0   : > { %v1513_v0 = vmov 0.0|0.0   ;;  %vm1514_vm0 = vmmov 0   ;;  %v1515_v1 = vmov 0.0   ;;  %v432_v2 = vld [vmem:[#allocation5] sm:$0xff]  ;;  %v433_v3 = vld [vmem:[#allocation5 + $0x8] sm:$0xff]  ;;  %v434_v4 = vld [vmem:[#allocation5 + $0x10] sm:$0xff] }
  0xb1   : > { %1473 = vsyncadd (%p2064_p1), [#allocation9], 4294967040  ;;  %1059 = vmatprep.subr.bf16.mxu0 %v1513_v0  ;;  %1037 = vmatprep.mubr.msk.f32.mxu0 %vm1514_vm0, %v1515_v1  ;;  %v1060_v5 = vpack.c.bf16 %v433_v3, %v432_v2  ;;  %v435_v6 = vld [vmem:[#allocation5 + $0x18] sm:$0xff]  ;;  %v436_v8 = vld [vmem:[#allocation5 + $0x20] sm:$0xff]  ;;  %vm440_vm1 = vcmask 523264   ;;  %s1516_s8 = smov 80  }
  0xb2   : > { %1071 = vmatprep.subr.bf16.mxu1 %v1513_v0  ;;  %1056 = vmatprep.mubr.msk.f32.mxu1 %vm1514_vm0, %v1515_v1  ;;  %v1063_v7 = vpack.c.bf16 %v435_v6, %v434_v4  ;;  %v437_v9 = vld [vmem:[#allocation5 + $0x28] sm:$0xff]  ;;  %v438_v11 = vld [vmem:[#allocation5 + $0x30] sm:$0xff]  ;;  %v439_v12 = vld [vmem:[#allocation5 + $0x38] sm:$0xff]  ;;  %s1517_s21 = smov 112   ;;  %s1518_s17 = smov 96   ;;  %vm515_vm2 = vcmask 1047680  }
  0xb3   : > { %1061 = vmatpush3.bf16.msra.mxu0 %v1060_v5  ;;  %v1066_v10 = vpack.c.bf16 %v437_v9, %v436_v8  ;;  %v1069_v13 = vpack.c.bf16 %v439_v12, %v438_v11  ;;  %v429_v14 = vld [vmem:[%s371_s15] sm:$0xff]  ;;  %v615_v15 = vld [vmem:[#allocation7] sm:$0xff]  ;;  %v616_v16 = vld [vmem:[#allocation7 + $0x8] sm:$0xff]  ;;  %s1519_s12 = smov 16   ;;  %s2041_s11 = smov 8   ;;  %vm533_vm3 = vcmask 130048  }
  0xb4   : > { %1062 = vmatprep.subr.bf16.mxu0 %v1513_v0  ;;  %v617_v17 = vld [vmem:[#allocation7 + $0x10] sm:$0xff]  ;;  %v1072_v18 = vpack.c.bf16 %v616_v16, %v615_v15  ;;  %v618_v19 = vld [vmem:[#allocation7 + $0x18] sm:$0xff]  ;;  %v619_v21 = vld [vmem:[#allocation7 + $0x20] sm:$0xff]  ;;  %s1521_s16 = smov 48   ;;  %s1522_s22 = smov 32  }
  0xb5   : > { %v1075_v20 = vpack.c.bf16 %v618_v19, %v617_v17  ;;  %v620_v22 = vld [vmem:[#allocation7 + $0x28] sm:$0xff]  ;;  %v621_v24 = vld [vmem:[#allocation7 + $0x30] sm:$0xff]  ;;  %v622_v25 = vld [vmem:[#allocation7 + $0x38] sm:$0xff]  ;;  %s1523_s14 = smov 24   ;;  %s1524_s23 = smov 40  }
  0xb6   : > { %1073 = vmatpush3.bf16.msra.mxu1 %v1072_v18  ;;  %v1078_v23 = vpack.c.bf16 %v620_v22, %v619_v21  ;;  %v1081_v26 = vpack.c.bf16 %v622_v25, %v621_v24  ;;  %v431_v40 = vld [vmem:[#allocation10] sm:$0xff]  ;;  %v1847_v42 = vld [vmem:[#allocation8] sm:$0xff]  ;;  %s1525_s9 = smov 120   ;;  %s985_s10 = sshll.u32 %s1800_s1, 5 }
  0xb7   : > { %1064 = vmatpush3.bf16.msra.mxu0 %v1063_v7  ;;  %1074 = vmatprep.subr.bf16.mxu1 %v1513_v0  ;;  %s1876_s15 = scalar_lea.vmem [#allocation11], %s985_s10  ;;  %p2065_p0 = scmp.ne.s32.totalorder %s2056_s18, 0 }
  0xb8   : > { %1065 = vmatprep.subr.bf16.mxu0 %v1513_v0 }
  0xba   : > { %1076 = vmatpush3.bf16.msra.mxu1 %v1075_v20 }
  0xbb   : > { %1067 = vmatpush3.bf16.msra.mxu0 %v1066_v10  ;;  %1077 = vmatprep.subr.bf16.mxu1 %v1513_v0 }
  0xbc   : > { %1068 = vmatprep.subr.bf16.mxu0 %v1513_v0 }
  0xbe   : > { %1079 = vmatpush3.bf16.msra.mxu1 %v1078_v23 }
  0xbf   : > { %1070 = vmatpush3.bf16.msra.mxu0 %v1069_v13  ;;  %1080 = vmatprep.subr.bf16.mxu1 %v1513_v0 }
  0xc2   : > { %1038 = vmatmul.mubr.msk.f32.vlgmr.msra.gmra.mrb[0].mxu0 %vm440_vm1, %v429_v14  ;;  %1082 = vmatpush3.bf16.msra.mxu1 %v1081_v26 }
  0xc5   : > { %1057 = vmatmul.mubr.msk.f32.vlgmr.msra.gmra.mrb[0].mxu1 %vm440_vm1, %v429_v14 }
 0x195   : > { %v1823_v27 = vpop.f32.mrb[0].mxu0 }
 0x196   : > { %593 = vrot.lane.b32.xlu1 %v1823_v27, %s1516_s8  ;;  %541 = vrot.lane.b32.xlu0 %v1823_v27, %s1517_s21  ;;  %v1039_v28 = vpop.f32.mrb[1].mxu0  ;;  %v514_v12 = vmul.f32 %v1823_v27, %v1847_v42 }
 0x198   : > { %v1831_v29 = vpop.f32.mrb[0].mxu1 }
 0x199   : > { %v1058_v30 = vpop.f32.mrb[1].mxu1  ;;  %v693_v17 = vmul.f32 %v1831_v29, %v1847_v42 }
 0x19a   : > { %567 = vrot.lane.b32.xlu0 %v1823_v27, %s1518_s17 }
 0x208   : > { %v542_v31 = vpop.permute.xlu0 %541  ;;  %v594_v32 = vpop.permute.xlu1 %593 }
 0x209   : > { %544 = vrot.lane.b32.xlu1 %v542_v31, %s1519_s12 }
 0x20c   : > { %v568_v33 = vpop.permute.xlu0 %567 }
 0x20d   : > { %596 = vrot.lane.b32.xlu1 %v594_v32, %s1519_s12  ;;  %570 = vrot.lane.b32.xlu0 %v568_v33, %s1519_s12 }
 0x211   : > { %516 = vrot.lane.b32.xlu0 %v1823_v27, %s1519_s12 }
 0x27b   : > { %v545_v34 = vpop.permute.xlu1 %544 }
 0x27c   : > { %v546_v35 = vsel %vm515_vm2, %v545_v34, %v542_v31 }
 0x27d   : > { %547 = vrot.lane.b32.xlu1 %v546_v35, %s1519_s12 }
 0x27f   : > { %v597_v36 = vpop.permute.xlu1 %596  ;;  %v571_v37 = vpop.permute.xlu0 %570 }
 0x280   : > { %v598_v38 = vsel %vm515_vm2, %v597_v36, %v594_v32  ;;  %v572_v39 = vsel %vm515_vm2, %v571_v37, %v568_v33 }
 0x281   : > { %599 = vrot.lane.b32.xlu1 %v598_v38, %s1519_s12  ;;  %573 = vrot.lane.b32.xlu0 %v572_v39, %s1519_s12 }
 0x283   : > { %v517_v41 = vpop.permute.xlu0 %516 }
 0x284   : > { %v518_v43 = vsel %vm515_vm2, %v517_v41, %v1823_v27 }
 0x285   : > { %523 = vrot.lane.b32.xlu1 %v431_v40, %s2041_s11  ;;  %694 = vrot.lane.b32.xlu0 %v1831_v29, %s1519_s12 }
 0x289   : > { %536 = vrot.lane.b32.xlu1 %v1847_v42, %s1519_s12  ;;  %519 = vrot.lane.b32.xlu0 %v518_v43, %s1519_s12 }
 0x28d   : > { %589 = vrot.lane.b32.xlu1 %v1847_v42, %s1521_s16  ;;  %563 = vrot.lane.b32.xlu0 %v1847_v42, %s1522_s22  ;;  %s2042_s16 = sshll.u32 %s1496_s27, 7 }
 0x2ef   : > { %v548_v44 = vpop.permute.xlu1 %547 }
 0x2f0   : > { %v549_v47 = vsel %vm515_vm2, %v548_v44, %v542_v31 }
 0x2f3   : > { %v600_v45 = vpop.permute.xlu1 %599  ;;  %v574_v46 = vpop.permute.xlu0 %573 }
 0x2f4   : > { %v575_v52 = vsel %vm515_vm2, %v574_v46, %v568_v33  ;;  %v601_v53 = vsel %vm515_vm2, %v600_v45, %v594_v32 }
 0x2f7   : > { %v524_v48 = vpop.permute.xlu1 %523  ;;  %v695_v49 = vpop.permute.xlu0 %694 }
 0x2f8   : > { %v696_v50 = vsel %vm515_vm2, %v695_v49, %v1831_v29  ;;  %v550_v51 = vmul.f32 %v549_v47, %v524_v48  ;;  %v576_v55 = vmul.f32 %v575_v52, %v524_v48  ;;  %v602_v57 = vmul.f32 %v601_v53, %v524_v48 }
 0x2f9   : > { %697 = vrot.lane.b32.xlu0 %v696_v50, %s1519_s12  ;;  %s717_s12 = sand.u32 1, %s1601_s30  }
 0x2fa   : > { %552 = vrot.lane.b32.xlu1 %v550_v51, %s2041_s11  ;;  %s1526_s11 = smov [#allocation12]  }
 0x2fb   : > { %v520_v54 = vpop.permute.xlu0 %519  ;;  %v537_v59 = vpop.permute.xlu1 %536 }
 0x2fc   : > { %v521_v56 = vsel %vm515_vm2, %v520_v54, %v1823_v27  ;;  %v539_v62 = vmul.f32 %v537_v59, %v1823_v27 }
 0x2fd   : > { %578 = vrot.lane.b32.xlu0 %v576_v55, %s1523_s14  ;;  %v526_v58 = vmul.f32 %v524_v48, %v521_v56  ;;  %s739_s14 = sshll.u32 %s1876_s15, 4  ;;  %s1897_s14 = int_to_ptr.vmem [resolvable:$true] %s739_s14 }
 0x2fe   : > { %604 = vrot.lane.b32.xlu1 %v602_v57, %s1524_s23 }
 0x2ff   : > { %v564_v60 = vpop.permute.xlu0 %563  ;;  %v590_v61 = vpop.permute.xlu1 %589 }
 0x300   : > { %v566_v4 = vmul.f32 %v564_v60, %v1823_v27  ;;  %v592_v5 = vmul.f32 %v590_v61, %v1823_v27 }
 0x301   : > { %528 = vrot.lane.b32.xlu0 %v526_v58, %s1525_s9 }
 0x36b   : > { %v698_v63 = vpop.permute.xlu0 %697 }
 0x36c   : > { %v699_v0 = vsel %vm515_vm2, %v698_v63, %v1831_v29  ;;  %v553_v1 = vpop.permute.xlu1 %552 }
 0x36d   : > { %v700_v2 = vmul.f32 %v699_v0, %v524_v48  ;;  %v555_v3 = vadd.f32 %v553_v1, %v539_v62 }
 0x36f   : > { %v556_v6 = vmul.f32 0.25, %v555_v3  ;;  %702 = vrot.lane.b32.xlu1 %v700_v2, %s1525_s9  ;;  %v579_v7 = vpop.permute.xlu0 %578  ;;  %s1893_s9 = scalar_lea.hbm %s2034_s6, %s2042_s16  ;;  %s1358_s16 = sshll.u32 %s1526_s11, 4  ;;  %s1359_s16 = int_to_ptr.vmem [resolvable:$false] %s1358_s16 }
 0x370   : > { %v581_v8 = vadd.f32 %v579_v7, %v566_v4  ;;  %v605_v9 = vpop.permute.xlu1 %604  ;;  %s1360_s0 = scalar_lea.vmem %s1359_s16, 256 }
 0x371   : > { %v607_v10 = vadd.f32 %v605_v9, %v592_v5  ;;  %558 = vrot.lane.b32.xlu0 %v556_v6, %s1517_s21 }
 0x372   : > { %v582_v11 = vmul.f32 0.25, %v581_v8 }
 0x373   : > { %v608_v13 = vmul.f32 0.25, %v607_v10  ;;  %v529_v14 = vpop.permute.xlu0 %528 }
 0x374   : > { %v531_v15 = vadd.f32 %v529_v14, %v514_v12  ;;  %584 = vrot.lane.b32.xlu1 %v582_v11, %s1518_s17  ;;  %s420_s17 = scalar_lea.vmem [#allocation12], %s1803_s7 }
 0x375   : > { %610 = vrot.lane.b32.xlu0 %v608_v13, %s1516_s8  ;;  %s757_s22 = sshll.u32 %s420_s17, 4  ;;  %s1908_s8 = scalar_lea.sflag [#allocation13], %s717_s12  ;;  %s1895_s22 = int_to_ptr.vmem [resolvable:$true] %s757_s22 }
 0x376   : > { %v532_v16 = vmul.f32 0.25, %v531_v15  ;;  %s1354_s23 = scalar_lea.vmem %s1895_s22, 128  ;;  %p1361_p8 = scmp.lt.s32.totalorder %s1895_s22, %s1359_s16 }
 0x377   : > { %p1355_p2 = scmp.ne.s32.totalorder %s1895_s22, %s1354_s23  ;;  %p1362_p3 = scmp.lt.s32.totalorder %s1360_s0, %s1354_s23 }
 0x378   : > { %534 = vst.msk [vmem:[%s1876_s15] sm:$0xff] %vm533_vm3, %v532_v16  ;;  %708 = vrot.lane.b32.xlu1 %v1831_v29, %s1517_s21  ;;  %s2043_s21 = scalar_lea.vmem [#allocation14], %s1803_s7 }
 0x379   : > { %s1905_s10 = sshll.u32 %s2043_s21, 4  ;;  %p1356_p7 = pnand %p1355_p2, %p2065_p0  ;;  %s1951_s10 = int_to_ptr.vmem [resolvable:$true] %s1905_s10 }
 0x37a   : > { %p1363_p11 = por %p1362_p3, %p1361_p8 }
 0x37b   : > { %p1357_p5 = pneg %p1356_p7 }
 0x37d   : > { %p1364_p6 = pnand %p1363_p11, %p1357_p5 }
 0x3e1   : > { %v703_v18 = vpop.permute.xlu1 %702 }
 0x3e2   : > { %v705_v19 = vadd.f32 %v703_v18, %v693_v17 }
 0x3e3   : > { %v559_v20 = vpop.permute.xlu0 %558 }
 0x3e4   : > { %989 = vst.msk [vmem:[%s1876_s15 + $0x8] sm:$0xff] %vm533_vm3, %v559_v20  ;;  %706 = vst.msk [vmem:[%s420_s17] sm:$0xff] %vm533_vm3, %v705_v19 }
 0x3e5   : > { %1367 = shalt.err (!%p1364_p6)
}
 0x3e6   : > { %s1368_s12 = scalar_lea.hbm %s1893_s9, 128  ;;  %s1372_s11 = scalar_lea.hbm %s2034_s6, 256 }
 0x3e7   : > { %p1369_p13 = scmp.ne.s32.totalorder %s1893_s9, %s1368_s12  ;;  %p1373_p9 = scmp.lt.u32.totalorder %s1893_s9, %s2034_s6 }
 0x3e8   : > { %p1374_p10 = scmp.lt.u32.totalorder %s1372_s11, %s1368_s12  ;;  %p1376_p2 = scmp.lt.u32.totalorder %s1368_s12, %s1893_s9 }
 0x3e9   : > { %p1370_p12 = pnand %p1369_p13, %p2065_p0 }
 0x3ea   : > { %p1375_p1 = por %p1374_p10, %p1373_p9 }
 0x3eb   : > { %p1371_p4 = pneg %p1370_p12 }
 0x3ec   : > { %p1377_p7 = por %p1376_p2, %p1375_p1 }
 0x3ee   : > { %p1378_p5 = pnand %p1377_p7, %p1371_p4 }
 0x3f0   : > { %1381 = shalt.err (!%p1378_p5)
}
 0x3f1   : > { %1102 = dma.vmem_to_hbm [thread:$0]  (%p2065_p0), %s1895_s22, 128, %s1893_s9, %s1908_s8   ;;  %v585_v21 = vpop.permute.xlu1 %584  ;;  %v611_v22 = vpop.permute.xlu0 %610 }
 0x3f2   : > { %s2066_s0 = sshll.u32 %s1496_s27, 9  ;;  %990 = vst.msk [vmem:[%s1876_s15 + $0x10] sm:$0xff] %vm533_vm3, %v585_v21  ;;  %991 = vst.msk [vmem:[%s1876_s15 + $0x18] sm:$0xff] %vm533_vm3, %v611_v22  ;;  %s2067_s12 = sshll.u32 %s1496_s27, 7 }
 0x3f3   : > { %s1937_s23 = scalar_lea.hbm %s2033_s5, %s2066_s0  ;;  %s2068_s16 = sld [smem:[#allocation23_spill]] }
 0x3f4   : > { %s713_s22 = scalar_lea.sflag [#allocation4], %s1800_s1  ;;  %s1382_s9 = scalar_lea.vmem %s1897_s14, 512 }
 0x3f5   : > { %p1383_p8 = scmp.ne.s32.totalorder %s1897_s14, %s1382_s9  ;;  %s1527_s0 = smov [#allocation11]  }
 0x3f6   : > { %s1386_s30 = sshll.u32 %s1527_s0, 4  ;;  %s1387_s30 = int_to_ptr.vmem [resolvable:$false] %s1386_s30 }
 0x3f7   : > { %p1384_p3 = pnand %p1383_p8, %p2065_p0  ;;  %s1388_s21 = scalar_lea.vmem %s1387_s30, 1024 }
 0x3f8   : > { %p1389_p6 = scmp.lt.s32.totalorder %s1897_s14, %s1387_s30  ;;  %p1390_p13 = scmp.lt.s32.totalorder %s1388_s21, %s1382_s9 }
 0x3f9   : > { %s1948_s2 = scalar_lea.hbm %s2068_s16, %s2067_s12  ;;  %p1385_p11 = pneg %p1384_p3 }
 0x3fa   : > { %p1391_p12 = por %p1390_p13, %p1389_p6 }
 0x3fc   : > { %p1392_p4 = pnand %p1391_p12, %p1385_p11 }
 0x3fe   : > { %1395 = shalt.err (!%p1392_p4)
}
 0x3ff   : > { %s1396_s27 = scalar_lea.hbm %s1937_s23, 512  ;;  %s1400_s17 = scalar_lea.hbm %s2033_s5, 1024 }
 0x400   : > { %p1397_p9 = scmp.ne.s32.totalorder %s1937_s23, %s1396_s27  ;;  %p1401_p2 = scmp.lt.u32.totalorder %s1937_s23, %s2033_s5 }
 0x401   : > { %p1402_p7 = scmp.lt.u32.totalorder %s1400_s17, %s1396_s27  ;;  %p1404_p8 = scmp.lt.u32.totalorder %s1396_s27, %s1937_s23 }
 0x402   : > { %p1398_p10 = pnand %p1397_p9, %p2065_p0 }
 0x403   : > { %p1403_p5 = por %p1402_p7, %p1401_p2 }
 0x404   : > { %p1399_p1 = pneg %p1398_p10 }
 0x405   : > { %p1405_p3 = por %p1404_p8, %p1403_p5 }
 0x407   : > { %p1406_p11 = pnand %p1405_p3, %p1399_p1 }
 0x409   : > { %1409 = shalt.err (!%p1406_p11)
}
 0x40a   : > { %s1528_s9 = smov 128   ;;  %s2069_s30 = smov 8   ;;  %v709_v23 = vpop.permute.xlu1 %708 }
 0x40b   : > { %1101 = dma.vmem_to_hbm [thread:$0]  (%p2065_p0), %s1897_s14, 512, %s1937_s23, %s713_s22, %s1528_s9, %s1528_s9, %s2069_s30  }
 0x40c   : > { %s2070_s21 = scalar_lea.vmem [#allocation14], %s1803_s7  ;;  %s1410_s27 = scalar_lea.vmem %s1951_s10, 128 }
 0x40d   : > { %711 = vst.msk [vmem:[%s2070_s21] sm:$0xff] %vm533_vm3, %v709_v23  ;;  %p1411_p6 = scmp.ne.s32.totalorder %s1951_s10, %s1410_s27  ;;  %s1529_s15 = smov [#allocation14]  }
 0x40e   : > { %s1414_s12 = sshll.u32 %s1529_s15, 4  ;;  %s1415_s12 = int_to_ptr.vmem [resolvable:$false] %s1414_s12 }
 0x40f   : > { %p1412_p13 = pnand %p1411_p6, %p2065_p0  ;;  %s1416_s1 = scalar_lea.vmem %s1415_s12, 256 }
 0x410   : > { %p1417_p4 = scmp.lt.s32.totalorder %s1951_s10, %s1415_s12  ;;  %p1418_p9 = scmp.lt.s32.totalorder %s1416_s1, %s1410_s27 }
 0x411   : > { %p1413_p12 = pneg %p1412_p13 }
 0x412   : > { %p1419_p10 = por %p1418_p9, %p1417_p4 }
 0x414   : > { %p1420_p1 = pnand %p1419_p10, %p1413_p12 }
 0x416   : > { %1423 = shalt.err (!%p1420_p1)
}
 0x417   : > { %s1424_s7 = scalar_lea.hbm %s1948_s2, 128  ;;  %s1428_s22 = scalar_lea.hbm %s2068_s16, 256 }
 0x418   : > { %p1425_p2 = scmp.ne.s32.totalorder %s1948_s2, %s1424_s7  ;;  %p1429_p8 = scmp.lt.u32.totalorder %s1948_s2, %s2068_s16 }
 0x419   : > { %p1430_p3 = scmp.lt.u32.totalorder %s1428_s22, %s1424_s7  ;;  %p1432_p6 = scmp.lt.u32.totalorder %s1424_s7, %s1948_s2 }
 0x41a   : > { %p1426_p7 = pnand %p1425_p2, %p2065_p0 }
 0x41b   : > { %p1431_p11 = por %p1430_p3, %p1429_p8 }
 0x41c   : > { %p1427_p5 = pneg %p1426_p7 }
 0x41d   : > { %p1433_p13 = por %p1432_p6, %p1431_p11 }
 0x41f   : > { %p1434_p12 = pnand %p1433_p13, %p1427_p5 }
 0x421   : > { %1437 = shalt.err (!%p1434_p12)
}
 0x422   : > { %1103 = dma.vmem_to_hbm [thread:$0]  (%p2065_p0), %s1951_s10, 128, %s1948_s2, %s1908_s8  }
 0x423 PF: > { %s784_s0 = sand.u32 1, %s1484_s24   ;;  %p2071_p4 = scmp.ne.s32.totalorder %s2057_s20, 0 }
 0x424   : > { %p2072_p9 = scmp.ge.s32.totalorder %s1504_s29, 2  ;;  %s785_s9 = scalar_lea.sflag [#allocation4], %s784_s0 }
 0x426   : > { %p1125_p10 = pnand %p2072_p9, %p2071_p4 }
 0x428   : > { %1475 = dma.done.wait (!%p1125_p10), %s785_s9, 512  }
 0x429   : > { %1477 = vsyncadd (!%p1125_p10), %s785_s9, 4294966784  ;;  %s2073_s30 = sadd.s32 4294967294, %s1504_s29  }
 0x42a   : > { %s793_s21 = sand.u32 1, %s2073_s30  }
 0x42b   : > { %s794_s27 = scalar_lea.sflag [#allocation13], %s793_s21 }
 0x42c   : > { %1479 = dma.done.wait (!%p1125_p10), %s794_s27, 256  }
 0x42d   : > { %1481 = vsyncadd (!%p1125_p10), %s794_s27, 4294967040  ;;  %s29_s29 = sadd.s32 1, %s1504_s29   ;;  %s2074_s24 = smov %s1488_s25 }
 0x42e   : > { %p26_p0 = scmp.ge.s32.totalorder %s29_s29, 4   ;;  %s2075_s25 = smov %s1492_s26 }
 0x42f   : > { %s2076_s26 = smov %s1750_s19  ;;  %s2077_s27 = smov %s1500_s28 }
 0x430   : > { %s2078_s28 = smov %s2080_s13  ;;  %28 = sbr.rel (!%p26_p0) target bundleno = 15 (0xf), region = 140 }
 0x437   :  { %808 = vsyncpa [#allocation3], 1 }
 0x438   :  { %810 = vsyncpa [#allocation3 + $0x1], 1 }
 0x439   :  { %811 = vsyncpa [#allocation6], 1 }
 0x43a   :  { %812 = vsyncpa [#allocation9], 1 }
 0x43b   :  { %813 = vsyncpa [#allocation4], 1 }
 0x43c   :  { %815 = vsyncpa [#allocation4 + $0x1], 1 }
 0x43d   :  { %816 = vsyncpa [#allocation13], 1 }
 0x43e   :  { %818 = vsyncpa [#allocation13 + $0x1], 1 }

</bundles_post_ra>
